<compile_context>
chip_gen: v5e
topology: v5e:2x2
jax: 0.10.0
libtpu: 0.0.40
codegen_flags: <defaults>
</compile_context>

<pallas_src>
import functools
import math

import jax
import jax.numpy as jnp
from jax.experimental import pallas as pl
from jax.experimental.pallas import tpu as pltpu


def _mha_kernel(x_ref, wqkv_ref, wo_heads_ref, bo_ref, bias_ref, o_ref, *, num_heads):
    """One grid step = one block of `rows = batches_per_block * N` token rows.

    All tensors live fully in VMEM. The block-diagonal causal bias keeps tokens from
    attending across batch boundaries inside the block.
    """
    rows, d = x_ref.shape
    hd = d // num_heads

    # In-kernel bf16 cast of x (hidden under the MXU), then one fused QKV MXU pass.
    xb = x_ref[...].astype(jnp.bfloat16)                                    # (rows, D) bf16
    qkv = jnp.dot(xb, wqkv_ref[...], preferred_element_type=jnp.float32)    # (rows, 3D) f32
    qkv = qkv.astype(jnp.bfloat16)

    # One consolidated head gather: (rows, 3D) -> three head-major (H, rows, hd) stacks.
    # Static lane slices + a leading-axis stack (lowering-safe); everything downstream is
    # head-batched so no further per-head slicing happens.
    def gather_heads(base):
        return jnp.stack(
            [qkv[:, base + h * hd: base + (h + 1) * hd] for h in range(num_heads)], axis=0)

    q = gather_heads(0)          # (H, rows, hd) bf16, attention scale already folded in
    k = gather_heads(d)
    v = gather_heads(2 * d)

    # Head-batched NT scores matmul (no explicit k transpose), f32 accumulation.
    scores = jnp.einsum('hqd,hkd->hqk', q, k,
                        preferred_element_type=jnp.float32)                 # (H, rows, rows)
    scores = scores + bias_ref[...]      # precomputed block-diagonal causal bias, bcast over H

    # Numerically stable f32 softmax; divide on the EUP via approx reciprocal.
    m = jnp.max(scores, axis=-1, keepdims=True)
    e = jnp.exp(scores - m)
    inv_l = pl.reciprocal(jnp.sum(e, axis=-1, keepdims=True), approx=True)
    attn = (e * inv_l).astype(jnp.bfloat16)                                 # (H, rows, rows)

    # Head-batched attn @ V.
    ctx = jnp.einsum('hqk,hkd->hqd', attn, v,
                     preferred_element_type=jnp.float32)                    # (H, rows, hd) f32

    # Out-projection, head-batched: contribution_h = ctx_h @ W_o^T[h]; summing over the head
    # (major) axis is exactly ctx_flat @ W_o^T, so no lane-merge concatenate is materialized.
    parts = jnp.einsum('hrd,hdo->hro', ctx.astype(jnp.bfloat16), wo_heads_ref[...],
                       preferred_element_type=jnp.float32)                  # (H, rows, D) f32
    out = jnp.sum(parts, axis=0) + bo_ref[...]                              # (rows, D) f32

    o_ref[...] = out.astype(o_ref.dtype)


def mha_einsum_forward(x, w_query, w_key, w_value, w_out, b_out, num_heads,
                       num_batch_blocks=1):
    """x: (B, N, D) float32.  Returns (B, N, D) float32.

    num_batch_blocks: number of grid steps the batch is split into (default 1 = fully
    collapsed grid; use 2 on v7x with larger even B to feed both TensorCores).
    """
    b, n, d = x.shape
    assert d % num_heads == 0
    assert b % num_batch_blocks == 0
    head_dim = d // num_heads
    scale = 1.0 / math.sqrt(head_dim)
    bpb = b // num_batch_blocks          # batches per grid step
    rows = bpb * n                       # token rows per grid step

    # Host-side layout plumbing (done once, cheap under jit):
    #  * fold the attention scale into W_query,
    #  * fuse the three projection weights into one (D, 3D) matrix,
    #  * pre-transpose the nn.Linear out_proj weight and split it per head -> (H, hd, D),
    #  * cast MXU operands to bf16 (accumulation stays f32 inside the kernel),
    #  * precompute the block-diagonal causal additive bias for a (rows, rows) score tile.
    # NOTE: x itself is NOT cast here — the bf16 cast happens inside the kernel.
    w_qkv = jnp.concatenate([w_query * scale, w_key, w_value], axis=1).astype(jnp.bfloat16)
    wo_heads = w_out.T.reshape(num_heads, head_dim, d).astype(jnp.bfloat16)
    b_o = b_out.reshape(1, d).astype(jnp.float32)

    r = jnp.arange(rows)
    same_batch = (r[:, None] // n) == (r[None, :] // n)
    causal = (r[None, :] % n) <= (r[:, None] % n)
    bias = jnp.where(same_batch & causal, 0.0, -1e30).astype(jnp.float32)   # (rows, rows)

    x_flat = x.reshape(b * n, d)         # free metadata reshape, stays f32

    kernel = functools.partial(_mha_kernel, num_heads=num_heads)
    out_flat = pl.pallas_call(
        kernel,
        out_shape=jax.ShapeDtypeStruct((b * n, d), x.dtype),
        grid_spec=pltpu.PrefetchScalarGridSpec(
            num_scalar_prefetch=0,
            grid=(num_batch_blocks,),
            in_specs=[
                pl.BlockSpec((rows, d), lambda i: (i, 0)),                   # x rows (f32)
                pl.BlockSpec((d, 3 * d), lambda i: (0, 0)),                  # fused W_qkv (bf16)
                pl.BlockSpec((num_heads, head_dim, d), lambda i: (0, 0, 0)),  # W_out^T per head
                pl.BlockSpec((1, d), lambda i: (0, 0)),                      # out_proj bias
                pl.BlockSpec((rows, rows), lambda i: (0, 0)),                # causal block bias
            ],
            out_specs=pl.BlockSpec((rows, d), lambda i: (i, 0)),
        ),
        compiler_params=pltpu.CompilerParams(dimension_semantics=("parallel",)),
    )(x_flat, w_qkv, wo_heads, b_o, bias)
    return out_flat.reshape(b, n, d)


def _reference(x, w_query, w_key, w_value, w_out, b_out, num_heads):
    """Pure-JAX f32 mirror of the PyTorch forward (eval mode)."""
    b, n, d = x.shape
    head_dim = d // num_heads
    q = jnp.einsum('bnd,di->bni', x, w_query)
    k = jnp.einsum('bnd,di->bni', x, w_key)
    v = jnp.einsum('bnd,di->bni', x, w_value)
    q = q.reshape(b, n, num_heads, head_dim).transpose(0, 2, 1, 3)
    k = k.reshape(b, n, num_heads, head_dim).transpose(0, 2, 1, 3)
    v = v.reshape(b, n, num_heads, head_dim).transpose(0, 2, 1, 3)
    scores = jnp.einsum('bhnd,bhmd->bhnm', q, k) / head_dim ** 0.5
    mask = jnp.triu(jnp.ones((n, n), dtype=bool), k=1)
    scores = jnp.where(mask[None, None], -jnp.inf, scores)
    attn = jax.nn.softmax(scores, axis=-1)
    ctx = jnp.einsum('bhnm,bhmd->bhnd', attn, v)
    ctx = ctx.transpose(0, 2, 1, 3).reshape(b, n, d)
    return ctx @ w_out.T + b_out


if __name__ == "__main__":
    # Small config consistent with the module (d_in == d_out, as the einsum requires).
    B, N, D = 2, 8, 32
    NUM_HEADS = 4

    key = jax.random.PRNGKey(0)
    kx, kq, kk, kv, kw, kb = jax.random.split(key, 6)

    # Parameter init mirroring PyTorch:
    #  - kaiming_uniform_(a=sqrt(5)) => U(-1/sqrt(fan_in), 1/sqrt(fan_in)), fan_in = d_in
    bound = 1.0 / math.sqrt(D)
    w_query = jax.random.uniform(kq, (D, D), jnp.float32, -bound, bound)
    w_key = jax.random.uniform(kk, (D, D), jnp.float32, -bound, bound)
    w_value = jax.random.uniform(kv, (D, D), jnp.float32, -bound, bound)
    w_out = jax.random.uniform(kw, (D, D), jnp.float32, -bound, bound)
    b_out = jax.random.uniform(kb, (D,), jnp.float32, -bound, bound)

    x = jax.random.normal(kx, (B, N, D), jnp.float32)

    fwd = jax.jit(functools.partial(mha_einsum_forward, num_heads=NUM_HEADS))
    out = fwd(x, w_query, w_key, w_value, w_out, b_out)
    out = jax.block_until_ready(out)

    ref = _reference(x, w_query, w_key, w_value, w_out, b_out, NUM_HEADS)
    assert out.shape == (B, N, D)
    # bf16 MXU operands + folded scale + approx reciprocal => compare against the f32
    # reference with a correspondingly loosened tolerance.
    assert jnp.allclose(out, ref, atol=2e-2, rtol=2e-2), "Pallas output mismatch vs reference"

    print("KERNEL_OK")
</pallas_src>

<mosaic_0001>
module attributes {stable_mosaic.version = 11 : i64} {
  func.func @_mha_kernel(%arg0: i32, %arg1: memref<16x32xf32, #tpu.memory_space<vmem>>, %arg2: memref<32x96xbf16, #tpu.memory_space<vmem>>, %arg3: memref<4x8x32xbf16, #tpu.memory_space<vmem>>, %arg4: memref<1x32xf32, #tpu.memory_space<vmem>>, %arg5: memref<16x16xf32, #tpu.memory_space<vmem>>, %arg6: memref<16x32xf32, #tpu.memory_space<vmem>>) attributes {dimension_semantics = [#tpu.dimension_semantics<parallel>], iteration_bounds = array<i64: 1>, scalar_prefetch = 0 : i64, scratch_operands = 0 : i64, tpu.core_type = #tpu.core_type<tc>, window_params = [{transform_indices = @transform_0, window_bounds = array<i64: 16, 32>}, {pipeline_mode = #tpu.pipeline_mode<synchronous>, transform_indices = @transform_1, window_bounds = array<i64: 32, 96>}, {pipeline_mode = #tpu.pipeline_mode<synchronous>, transform_indices = @transform_2, window_bounds = array<i64: 4, 8, 32>}, {pipeline_mode = #tpu.pipeline_mode<synchronous>, transform_indices = @transform_3, window_bounds = array<i64: 1, 32>}, {pipeline_mode = #tpu.pipeline_mode<synchronous>, transform_indices = @transform_4, window_bounds = array<i64: 16, 16>}, {transform_indices = @transform_5, window_bounds = array<i64: 16, 32>}]} {
    %c0 = arith.constant 0 : index
    %c0_0 = arith.constant 0 : index
    %0 = vector.load %arg1[%c0, %c0_0] : memref<16x32xf32, #tpu.memory_space<vmem>>, vector<16x32xf32>
    %1 = arith.truncf %0 : vector<16x32xf32> to vector<16x32xbf16>
    %c0_1 = arith.constant 0 : index
    %c0_2 = arith.constant 0 : index
    %2 = vector.load %arg2[%c0_1, %c0_2] : memref<32x96xbf16, #tpu.memory_space<vmem>>, vector<32x96xbf16>
    %cst = arith.constant dense<0.000000e+00> : vector<16x96xf32>
    %3 = tpu.matmul %1, %2, %cst {dimension_numbers = #tpu.dot_dimension_numbers<[1], [0], [0], [1], [0, 0, 1, 1], [], []>} : vector<16x32xbf16>, vector<32x96xbf16>, vector<16x96xf32> -> vector<16x96xf32>
    %4 = arith.truncf %3 : vector<16x96xf32> to vector<16x96xbf16>
    %5 = vector.extract_strided_slice %4 {offsets = [0, 0], sizes = [16, 8], strides = [1, 1]} : vector<16x96xbf16> to vector<16x8xbf16>
    %6 = vector.extract_strided_slice %4 {offsets = [0, 8], sizes = [16, 8], strides = [1, 1]} : vector<16x96xbf16> to vector<16x8xbf16>
    %7 = vector.extract_strided_slice %4 {offsets = [0, 16], sizes = [16, 8], strides = [1, 1]} : vector<16x96xbf16> to vector<16x8xbf16>
    %8 = vector.extract_strided_slice %4 {offsets = [0, 24], sizes = [16, 8], strides = [1, 1]} : vector<16x96xbf16> to vector<16x8xbf16>
    %9 = vector.shape_cast %5 : vector<16x8xbf16> to vector<1x16x8xbf16>
    %10 = vector.shape_cast %6 : vector<16x8xbf16> to vector<1x16x8xbf16>
    %11 = vector.shape_cast %7 : vector<16x8xbf16> to vector<1x16x8xbf16>
    %12 = vector.shape_cast %8 : vector<16x8xbf16> to vector<1x16x8xbf16>
    %13 = tpu.concatenate %9, %10, %11, %12 in 0 : vector<1x16x8xbf16>, vector<1x16x8xbf16>, vector<1x16x8xbf16>, vector<1x16x8xbf16> -> vector<4x16x8xbf16>
    %14 = vector.extract_strided_slice %4 {offsets = [0, 32], sizes = [16, 8], strides = [1, 1]} : vector<16x96xbf16> to vector<16x8xbf16>
    %15 = vector.extract_strided_slice %4 {offsets = [0, 40], sizes = [16, 8], strides = [1, 1]} : vector<16x96xbf16> to vector<16x8xbf16>
    %16 = vector.extract_strided_slice %4 {offsets = [0, 48], sizes = [16, 8], strides = [1, 1]} : vector<16x96xbf16> to vector<16x8xbf16>
    %17 = vector.extract_strided_slice %4 {offsets = [0, 56], sizes = [16, 8], strides = [1, 1]} : vector<16x96xbf16> to vector<16x8xbf16>
    %18 = vector.shape_cast %14 : vector<16x8xbf16> to vector<1x16x8xbf16>
    %19 = vector.shape_cast %15 : vector<16x8xbf16> to vector<1x16x8xbf16>
    %20 = vector.shape_cast %16 : vector<16x8xbf16> to vector<1x16x8xbf16>
    %21 = vector.shape_cast %17 : vector<16x8xbf16> to vector<1x16x8xbf16>
    %22 = tpu.concatenate %18, %19, %20, %21 in 0 : vector<1x16x8xbf16>, vector<1x16x8xbf16>, vector<1x16x8xbf16>, vector<1x16x8xbf16> -> vector<4x16x8xbf16>
    %23 = vector.extract_strided_slice %4 {offsets = [0, 64], sizes = [16, 8], strides = [1, 1]} : vector<16x96xbf16> to vector<16x8xbf16>
    %24 = vector.extract_strided_slice %4 {offsets = [0, 72], sizes = [16, 8], strides = [1, 1]} : vector<16x96xbf16> to vector<16x8xbf16>
    %25 = vector.extract_strided_slice %4 {offsets = [0, 80], sizes = [16, 8], strides = [1, 1]} : vector<16x96xbf16> to vector<16x8xbf16>
    %26 = vector.extract_strided_slice %4 {offsets = [0, 88], sizes = [16, 8], strides = [1, 1]} : vector<16x96xbf16> to vector<16x8xbf16>
    %27 = vector.shape_cast %23 : vector<16x8xbf16> to vector<1x16x8xbf16>
    %28 = vector.shape_cast %24 : vector<16x8xbf16> to vector<1x16x8xbf16>
    %29 = vector.shape_cast %25 : vector<16x8xbf16> to vector<1x16x8xbf16>
    %30 = vector.shape_cast %26 : vector<16x8xbf16> to vector<1x16x8xbf16>
    %31 = tpu.concatenate %27, %28, %29, %30 in 0 : vector<1x16x8xbf16>, vector<1x16x8xbf16>, vector<1x16x8xbf16>, vector<1x16x8xbf16> -> vector<4x16x8xbf16>
    "tpu.trace_start"() <{level = 10 : i32, message = "hqd,hkd->hqk"}> : () -> ()
    %cst_3 = arith.constant dense<0.000000e+00> : vector<4x16x16xf32>
    %32 = tpu.matmul %13, %22, %cst_3 {dimension_numbers = #tpu.dot_dimension_numbers<[2], [2], [1], [1], [0, 0, 0, 1, 1, 1], [0], [0]>} : vector<4x16x8xbf16>, vector<4x16x8xbf16>, vector<4x16x16xf32> -> vector<4x16x16xf32>
    "tpu.trace_stop"() : () -> ()
    %c0_4 = arith.constant 0 : index
    %c0_5 = arith.constant 0 : index
    %33 = vector.load %arg5[%c0_4, %c0_5] : memref<16x16xf32, #tpu.memory_space<vmem>>, vector<16x16xf32>
    %34 = vector.shape_cast %33 : vector<16x16xf32> to vector<1x16x16xf32>
    %35 = vector.broadcast %34 : vector<1x16x16xf32> to vector<4x16x16xf32>
    %36 = arith.addf %32, %35 : vector<4x16x16xf32>
    %cst_6 = arith.constant dense<0xFF800000> : vector<4x16xf32>
    %37 = vector.multi_reduction <maximumf>, %36, %cst_6 [2] : vector<4x16x16xf32> to vector<4x16xf32>
    %38 = vector.shape_cast %37 : vector<4x16xf32> to vector<4x16x1xf32>
    %39 = vector.broadcast %38 : vector<4x16x1xf32> to vector<4x16x16xf32>
    %40 = arith.subf %36, %39 : vector<4x16x16xf32>
    %41 = math.exp %40 : vector<4x16x16xf32>
    %cst_7 = arith.constant dense<0.000000e+00> : vector<4x16xf32>
    %42 = vector.multi_reduction <add>, %41, %cst_7 [2] : vector<4x16x16xf32> to vector<4x16xf32>
    %43 = vector.shape_cast %42 : vector<4x16xf32> to vector<4x16x1xf32>
    %44 = tpu.reciprocal %43 {approx = true} : vector<4x16x1xf32> -> vector<4x16x1xf32>
    %45 = vector.broadcast %44 : vector<4x16x1xf32> to vector<4x16x16xf32>
    %46 = arith.mulf %41, %45 : vector<4x16x16xf32>
    %47 = arith.truncf %46 : vector<4x16x16xf32> to vector<4x16x16xbf16>
    "tpu.trace_start"() <{level = 10 : i32, message = "hqk,hkd->hqd"}> : () -> ()
    %cst_8 = arith.constant dense<0.000000e+00> : vector<4x16x8xf32>
    %48 = tpu.matmul %47, %31, %cst_8 {dimension_numbers = #tpu.dot_dimension_numbers<[2], [1], [1], [2], [0, 0, 0, 1, 1, 2], [0], [0]>} : vector<4x16x16xbf16>, vector<4x16x8xbf16>, vector<4x16x8xf32> -> vector<4x16x8xf32>
    "tpu.trace_stop"() : () -> ()
    %49 = arith.truncf %48 : vector<4x16x8xf32> to vector<4x16x8xbf16>
    %c0_9 = arith.constant 0 : index
    %c0_10 = arith.constant 0 : index
    %c0_11 = arith.constant 0 : index
    %50 = vector.load %arg3[%c0_9, %c0_10, %c0_11] : memref<4x8x32xbf16, #tpu.memory_space<vmem>>, vector<4x8x32xbf16>
    "tpu.trace_start"() <{level = 10 : i32, message = "hrd,hdo->hro"}> : () -> ()
    %cst_12 = arith.constant dense<0.000000e+00> : vector<4x16x32xf32>
    %51 = tpu.matmul %49, %50, %cst_12 {dimension_numbers = #tpu.dot_dimension_numbers<[2], [1], [1], [2], [0, 0, 0, 1, 1, 2], [0], [0]>} : vector<4x16x8xbf16>, vector<4x8x32xbf16>, vector<4x16x32xf32> -> vector<4x16x32xf32>
    "tpu.trace_stop"() : () -> ()
    %cst_13 = arith.constant dense<0.000000e+00> : vector<16x32xf32>
    %52 = vector.multi_reduction <add>, %51, %cst_13 [0] : vector<4x16x32xf32> to vector<16x32xf32>
    %c0_14 = arith.constant 0 : index
    %c0_15 = arith.constant 0 : index
    %53 = vector.load %arg4[%c0_14, %c0_15] : memref<1x32xf32, #tpu.memory_space<vmem>>, vector<1x32xf32>
    %54 = vector.broadcast %53 : vector<1x32xf32> to vector<16x32xf32>
    %55 = arith.addf %52, %54 : vector<16x32xf32>
    %c0_16 = arith.constant 0 : index
    %c0_17 = arith.constant 0 : index
    %56 = vector.load %arg6[%c0_16, %c0_17] : memref<16x32xf32, #tpu.memory_space<vmem>>, vector<16x32xf32>
    tpu.vector_store %arg6[%c0_16, %c0_17], %55 {strides = array<i32>} : memref<16x32xf32, #tpu.memory_space<vmem>>, vector<16x32xf32>,
    return
  }
  func.func @transform_0(%arg0: i32) -> (i32, i32) {
    %c0_i32 = arith.constant 0 : i32
    %c0_i32_0 = arith.constant 0 : i32
    return %arg0, %c0_i32 : i32, i32
  }
  func.func @transform_1(%arg0: i32) -> (i32, i32) {
    %c0_i32 = arith.constant 0 : i32
    %c0_i32_0 = arith.constant 0 : i32
    %c0_i32_1 = arith.constant 0 : i32
    return %c0_i32, %c0_i32_0 : i32, i32
  }
  func.func @transform_2(%arg0: i32) -> (i32, i32, i32) {
    %c0_i32 = arith.constant 0 : i32
    %c0_i32_0 = arith.constant 0 : i32
    %c0_i32_1 = arith.constant 0 : i32
    %c0_i32_2 = arith.constant 0 : i32
    return %c0_i32, %c0_i32_0, %c0_i32_1 : i32, i32, i32
  }
  func.func @transform_3(%arg0: i32) -> (i32, i32) {
    %c0_i32 = arith.constant 0 : i32
    %c0_i32_0 = arith.constant 0 : i32
    %c0_i32_1 = arith.constant 0 : i32
    return %c0_i32, %c0_i32_0 : i32, i32
  }
  func.func @transform_4(%arg0: i32) -> (i32, i32) {
    %c0_i32 = arith.constant 0 : i32
    %c0_i32_0 = arith.constant 0 : i32
    %c0_i32_1 = arith.constant 0 : i32
    return %c0_i32, %c0_i32_0 : i32, i32
  }
  func.func @transform_5(%arg0: i32) -> (i32, i32) {
    %c0_i32 = arith.constant 0 : i32
    %c0_i32_0 = arith.constant 0 : i32
    return %arg0, %c0_i32 : i32, i32
  }
}

</mosaic_0001>

<bundles_post_ra>
// kernel: mha_einsum_forward.1
= control target key start
LH: loop header
LB: loop body
LE: loop exit
PB: predicated region body
PF: predicated region fallthrough
CT: control target
= control target key end

     0   :  { %s767_s0 = inlined_call_operand.vmem [shape: f32[16,32], index: 0, kind: input, shape index: {}]   ;;  %s768_s1 = inlined_call_operand.vmem [shape: bf16[32,96], index: 1, kind: input, shape index: {}]   ;;  %s769_s2 = inlined_call_operand.vmem [shape: bf16[4,8,32], index: 2, kind: input, shape index: {}]   ;;  %s770_s3 = inlined_call_operand.vmem [shape: f32[1,32], index: 3, kind: input, shape index: {}]   ;;  %s771_s4 = inlined_call_operand.vmem [shape: f32[16,16], index: 4, kind: input, shape index: {}]   ;;  %s772_s5 = inlined_call_operand.hbm [shape: f32[16,32], index: 5, kind: output, shape index: {}]  }
   0x1   :  { %v550_v0 = vld [vmem:[%s768_s1 + $0x8] sm:$0xff] }
   0x2   :  { %10 = vsyncpa [#allocation3], 0  ;;  %51 = vmatpush.bf16.msra.mxu0 %v550_v0  ;;  %v549_v1 = vld [vmem:[%s768_s1] sm:$0xff]  ;;  %v23_v3 = vld [vmem:[%s767_s0 + $0x8] sm:$0xff]  ;;  %vm41_vm0 = vcmask 261120   ;;  %s618_s26 = smov 104  }
   0x3   :  { %v22_v2 = vld [vmem:[%s767_s0] sm:$0xff]  ;;  %s619_s27 = smov 112   ;;  %s620_s1 = smov 120   ;;  %vm82_vm1 = vcmask 64512   ;;  %vm178_vm2 = vcmask 130048   ;;  %v76_v50 = vld [vmem:[%s771_s4 + $0x8] sm:$0xff] }
   0x4   :  { %v24_v4 = vpack.c.bf16 %v23_v3, %v22_v2  ;;  %s621_s0 = smov 96   ;;  %v75_v29 = vld [vmem:[%s771_s4] sm:$0xff]  ;;  %s622_s4 = smov 64   ;;  %vm395_vm3 = vcmask 1043456  }
   0x5   :  { %s623_s16 = smov [#allocation2]   ;;  %s516_s19 = sshll.u32 %s772_s5, 4  ;;  %s517_s19 = int_to_ptr.hbm [resolvable:$true] %s516_s19 }
   0x6   :  { %52 = vmatpush.bf16.msra.mxu0 %v549_v1  ;;  %s624_s20 = smov 128   ;;  %s625_s21 = smov 8  }
   0x9   :  { %536 = vmatmul.msk.bf16.vlgmr.msra.gmra.mxu0 %vm41_vm0, %v24_v4 }
  0x86   :  { %v54_v5 = vpop.f32.mrf.mxu0 }
  0x87   :  { %v59_v6 = vpack.c.bf16 %v54_v5, %v54_v5 }
  0x89   :  { %71 = vrot.lane.b32.xlu2 %v59_v6, %s618_s26  ;;  %67 = vrot.lane.b32.xlu1 %v59_v6, %s619_s27  ;;  %v77_v10 = vunpack.c.l.b16 %v59_v6 }
  0x8a   :  { %63 = vrot.lane.b32.xlu0 %v59_v6, %s620_s1 }
  0x8e   :  { %v56_v7 = vpop.f32.mrf.mxu0 }
  0x8f   :  { %v60_v8 = vpack.c.bf16 %v56_v7, %v56_v7 }
  0x91   :  { %73 = vrot.lane.b32.xlu2 %v60_v8, %s618_s26  ;;  %69 = vrot.lane.b32.xlu1 %v60_v8, %s619_s27  ;;  %v78_v9 = vunpack.c.l.b16 %v60_v8 }
  0x92   :  { %65 = vrot.lane.b32.xlu0 %v60_v8, %s620_s1 }
  0x93   :  { %v669_v11 = vpack.c.b16 %v78_v9, %v77_v10 }
  0x99   :  { %80 = vrot.lane.b32.xlu2 %v669_v11, %s621_s0 }
  0xe3   :  { %v72_v12 = vpop.permute.xlu2 %71 }
  0xe4   :  { %v153_v27 = vunpack.c.l.b16 %v72_v12 }
  0xeb   :  { %v74_v13 = vpop.permute.xlu2 %73 }
  0xec   :  { %v154_v26 = vunpack.c.l.b16 %v74_v13 }
  0xee   :  { %v681_v28 = vpack.c.b16 %v154_v26, %v153_v27 }
  0xf3   :  { %v81_v14 = vpop.permute.xlu2 %80 }
  0xf4   :  { %v87_v15 = vsel %vm82_vm1, %v81_v14, 0 }
  0xf5   :  { %96 = vmatpush.bf16.xpose.msra.mxu1 %v87_v15 }
  0xfb   :  { %v68_v16 = vpop.permute.xlu1 %67 }
  0xfc   :  { %v64_v17 = vpop.permute.xlu0 %63  ;;  %537 = vmatmul.msk.bf16.vlgmr.msra.gmra.mxu1 %vm82_vm1, %v669_v11  ;;  %v128_v19 = vunpack.c.l.b16 %v68_v16 }
  0xfd   :  { %v103_v22 = vunpack.c.l.b16 %v64_v17 }
 0x103   :  { %v70_v18 = vpop.permute.xlu1 %69 }
 0x104   :  { %v129_v20 = vunpack.c.l.b16 %v70_v18  ;;  %v66_v21 = vpop.permute.xlu0 %65 }
 0x105   :  { %v104_v23 = vunpack.c.l.b16 %v66_v21 }
 0x106   :  { %v675_v24 = vpack.c.b16 %v129_v20, %v128_v19 }
 0x107   :  { %v677_v25 = vpack.c.b16 %v104_v23, %v103_v22 }
 0x108   :  { %131 = vrot.lane.b32.xlu1 %v675_v24, %s621_s0 }
 0x109   :  { %106 = vrot.lane.b32.xlu0 %v677_v25, %s621_s0 }
 0x111   :  { %156 = vrot.lane.b32.xlu0 %v681_v28, %s621_s0 }
 0x179   :  { %v98_v30 = vpop.f32.mrf.mxu1 }
 0x17a   :  { %v99_v31 = vadd.f32 %v98_v30, %v75_v29  ;;  %v132_v32 = vpop.permute.xlu1 %131 }
 0x17b   :  { %v107_v33 = vpop.permute.xlu0 %106  ;;  %v137_v34 = vsel %vm82_vm1, %v132_v32, 0 }
 0x17c   :  { %v112_v35 = vsel %vm82_vm1, %v107_v33, 0  ;;  %146 = vmatpush.bf16.xpose.msra.mxu3 %v137_v34  ;;  %v179_v36 = vsel %vm178_vm2, %v99_v31, -inf }
 0x17d   :  { %121 = vmatpush.bf16.xpose.msra.mxu2 %v112_v35  ;;  %180 = vmax.xlane.f32.xlu1 %v179_v36 }
 0x181   :  { %v100_v63 = vpop.f32.mrf.mxu1 }
 0x182   :  { %v101_v0 = vadd.f32 %v100_v63, %v76_v50 }
 0x183   :  { %v157_v37 = vpop.permute.xlu0 %156  ;;  %539 = vmatmul.msk.bf16.vlgmr.msra.gmra.mxu3 %vm82_vm1, %v675_v24 }
 0x184   :  { %538 = vmatmul.msk.bf16.vlgmr.msra.gmra.mxu2 %vm82_vm1, %v677_v25  ;;  %v162_v38 = vsel %vm82_vm1, %v157_v37, 0  ;;  %v182_v1 = vsel %vm178_vm2, %v101_v0, -inf }
 0x185   :  { %171 = vmatpush.bf16.xpose.msrb.mxu0 %v162_v38 }
 0x18c   :  { %540 = vmatmul.msk.bf16.vlgmr.msrb.gmra.mxu0 %vm82_vm1, %v681_v28 }
 0x1f0   :  { %v181_v39 = vpop.xlane.xlu1 %180 }
 0x1f1   :  { %v203_v43 = vsub.f32 %v99_v31, %v181_v39 }
 0x1f3   :  { %v211_v48 = vmul.f32 1.442695, %v203_v43 }
 0x1f5   :  { %560 = vpow2.f32 %v211_v48 }
 0x1fb   :  { %v705_v59 = vpop.eup %560 }
 0x1fc   :  { %v227_v61 = vsel %vm178_vm2, %v705_v59, 0.0 }
 0x206   :  { %v148_v40 = vpop.f32.mrf.mxu3 }
 0x207   :  { %v123_v41 = vpop.f32.mrf.mxu2  ;;  %v149_v42 = vadd.f32 %v148_v40, %v75_v29 }
 0x208   :  { %v124_v44 = vadd.f32 %v123_v41, %v75_v29 }
 0x209   :  { %v173_v45 = vpop.f32.mrf.mxu0  ;;  %v191_v46 = vsel %vm178_vm2, %v149_v42, -inf }
 0x20a   :  { %192 = vmax.xlane.f32.xlu0 %v191_v46  ;;  %v185_v47 = vsel %vm178_vm2, %v124_v44, -inf  ;;  %v174_v49 = vadd.f32 %v173_v45, %v75_v29 }
 0x20b   :  { %186 = vmax.xlane.f32.xlu1 %v185_v47 }
 0x20c   :  { %v197_v54 = vsel %vm178_vm2, %v174_v49, -inf }
 0x20e   :  { %v150_v57 = vpop.f32.mrf.mxu3 }
 0x20f   :  { %v125_v51 = vpop.f32.mrf.mxu2  ;;  %v151_v60 = vadd.f32 %v150_v57, %v76_v50 }
 0x210   :  { %v126_v52 = vadd.f32 %v125_v51, %v76_v50 }
 0x211   :  { %v175_v53 = vpop.f32.mrf.mxu0  ;;  %v194_v62 = vsel %vm178_vm2, %v151_v60, -inf }
 0x212   :  { %v176_v55 = vadd.f32 %v175_v53, %v76_v50  ;;  %198 = vmax.xlane.f32.xlu0 %v197_v54  ;;  %v188_v56 = vsel %vm178_vm2, %v126_v52, -inf }
 0x213   :  { %189 = vmax.xlane.f32.xlu2 %v188_v56 }
 0x214   :  { %v200_v58 = vsel %vm178_vm2, %v176_v55, -inf }
 0x215   :  { %201 = vmax.xlane.f32.xlu1 %v200_v58 }
 0x21a   :  { %228 = vadd.xlane.f32.xlu0 %v227_v61 }
 0x21b   :  { %195 = vmax.xlane.f32.xlu2 %v194_v62 }
 0x223   :  { %183 = vmax.xlane.f32.xlu2 %v182_v1 }
 0x27d   :  { %v193_v16 = vpop.xlane.xlu0 %192 }
 0x27e   :  { %v187_v2 = vpop.xlane.xlu1 %186  ;;  %v207_v20 = vsub.f32 %v149_v42, %v193_v16 }
 0x27f   :  { %v205_v3 = vsub.f32 %v124_v44, %v187_v2 }
 0x280   :  { %v219_v23 = vmul.f32 1.442695, %v207_v20 }
 0x281   :  { %v215_v4 = vmul.f32 1.442695, %v205_v3 }
 0x283   :  { %562 = vpow2.f32 %v215_v4 }
 0x285   :  { %v199_v26 = vpop.xlane.xlu0 %198 }
 0x286   :  { %v190_v5 = vpop.xlane.xlu2 %189  ;;  %v209_v29 = vsub.f32 %v174_v49, %v199_v26 }
 0x287   :  { %v206_v6 = vsub.f32 %v126_v52, %v190_v5 }
 0x288   :  { %v223_v31 = vmul.f32 1.442695, %v209_v29  ;;  %v202_v32 = vpop.xlane.xlu1 %201 }
 0x289   :  { %v563_v7 = vpop.eup %562  ;;  %v217_v8 = vmul.f32 1.442695, %v206_v6  ;;  %v210_v34 = vsub.f32 %v176_v55, %v202_v32  ;;  %v386_v32 = vld [vmem:[%s769_s2 + $0xc] sm:$0xf] }
 0x28a   :  { %v233_v9 = vsel %vm178_vm2, %v563_v7, 0.0 }
 0x28b   :  { %564 = vpow2.f32 %v217_v8  ;;  %234 = vadd.xlane.f32.xlu2 %v233_v9  ;;  %v225_v36 = vmul.f32 1.442695, %v210_v34  ;;  %v472_v34 = vsel %vm395_vm3, %v386_v32, 0 }
 0x28e   :  { %v196_v10 = vpop.xlane.xlu2 %195 }
 0x28f   :  { %v208_v12 = vsub.f32 %v151_v60, %v196_v10 }
 0x291   :  { %v565_v13 = vpop.eup %564  ;;  %v221_v14 = vmul.f32 1.442695, %v208_v12 }
 0x292   :  { %v236_v15 = vsel %vm178_vm2, %v565_v13, 0.0 }
 0x293   :  { %566 = vpow2.f32 %v221_v14  ;;  %237 = vadd.xlane.f32.xlu0 %v236_v15 }
 0x296   :  { %v184_v17 = vpop.xlane.xlu2 %183 }
 0x297   :  { %v204_v18 = vsub.f32 %v101_v0, %v184_v17 }
 0x299   :  { %v567_v19 = vpop.eup %566  ;;  %v213_v21 = vmul.f32 1.442695, %v204_v18 }
 0x29a   :  { %v242_v22 = vsel %vm178_vm2, %v567_v19, 0.0 }
 0x29b   :  { %568 = vpow2.f32 %v213_v21  ;;  %243 = vadd.xlane.f32.xlu2 %v242_v22 }
 0x29c   :  { %570 = vpow2.f32 %v219_v23  ;;  %v384_v23 = vld [vmem:[%s769_s2 + $0x4] sm:$0xf] }
 0x29d   :  { %572 = vpow2.f32 %v223_v31  ;;  %v422_v26 = vsel %vm395_vm3, %v384_v23, 0 }
 0x29e   :  { %574 = vpow2.f32 %v225_v36 }
 0x2a1   :  { %v714_v27 = vpop.eup %568 }
 0x2a2   :  { %v230_v30 = vsel %vm178_vm2, %v714_v27, 0.0  ;;  %v571_v33 = vpop.eup %570 }
 0x2a3   :  { %231 = vadd.xlane.f32.xlu1 %v230_v30  ;;  %v239_v35 = vsel %vm178_vm2, %v571_v33, 0.0  ;;  %v573_v37 = vpop.eup %572 }
 0x2a4   :  { %v245_v38 = vsel %vm178_vm2, %v573_v37, 0.0  ;;  %v575_v39 = vpop.eup %574 }
 0x2a5   :  { %v248_v40 = vsel %vm178_vm2, %v575_v39, 0.0 }
 0x2a7   :  { %330 = vrot.lane.b32.xlu0 %v675_v24, %s622_s4  ;;  %v229_v24 = vpop.xlane.xlu0 %228 }
 0x2ab   :  { %240 = vadd.xlane.f32.xlu1 %v239_v35 }
 0x2af   :  { %355 = vrot.lane.b32.xlu0 %v681_v28, %s622_s4 }
 0x2b3   :  { %305 = vrot.lane.b32.xlu2 %v677_v25, %s622_s4  ;;  %246 = vadd.xlane.f32.xlu1 %v245_v38 }
 0x2bb   :  { %249 = vadd.xlane.f32.xlu1 %v248_v40 }
 0x2d4   :  { %280 = vrot.lane.b32.xlu1 %v669_v11, %s622_s4 }
 0x2fe   :  { %v235_v41 = vpop.xlane.xlu2 %234 }
 0x2ff   :  { %576 = vrcp.f32 %v235_v41 }
 0x305   :  { %v577_v43 = vpop.eup %576 }
 0x306   :  { %v238_v42 = vpop.xlane.xlu0 %237  ;;  %v261_v28 = vmul.f32 %v577_v43, %v563_v7 }
 0x307   :  { %578 = vrcp.f32 %v238_v42 }
 0x308   :  { %v269_v48 = vpack.c.bf16 %v261_v28, %v261_v28 }
 0x30a   :  { %v302_v49 = vunpack.c.l.b16 %v269_v48 }
 0x30d   :  { %v579_v44 = vpop.eup %578 }
 0x30e   :  { %v262_v45 = vmul.f32 %v579_v44, %v565_v13  ;;  %v244_v46 = vpop.xlane.xlu2 %243 }
 0x30f   :  { %580 = vrcp.f32 %v244_v46 }
 0x310   :  { %v270_v47 = vpack.c.bf16 %v262_v45, %v262_v45 }
 0x312   :  { %v303_v25 = vunpack.c.l.b16 %v270_v47 }
 0x314   :  { %v304_v52 = vpack.c.b16 %v303_v25, %v302_v49 }
 0x315   :  { %v581_v54 = vpop.eup %580 }
 0x316   :  { %v232_v50 = vpop.xlane.xlu1 %231  ;;  %v306_v51 = vpop.permute.xlu2 %305  ;;  %v264_v56 = vmul.f32 %v581_v54, %v567_v19 }
 0x317   :  { %318 = vmatpush.bf16.msrb.mxu2 %v306_v51 }
 0x318   :  { %v272_v58 = vpack.c.bf16 %v264_v56, %v264_v56 }
 0x319   :  { %v331_v11 = vpop.permute.xlu0 %330 }
 0x31a   :  { %542 = vmatmul.msk.bf16.vlgmr.msrb.gmra.mxu2 %vm178_vm2, %v304_v52  ;;  %343 = vmatpush.bf16.msrb.mxu3 %v331_v11  ;;  %v328_v63 = vunpack.c.l.b16 %v272_v58 }
 0x31b   :  { %431 = vmatpush.bf16.msra.mxu2 %v422_v26 }
 0x31e   :  { %v241_v53 = vpop.xlane.xlu1 %240 }
 0x31f   :  { %582 = vrcp.f32 %v241_v53 }
 0x321   :  { %v356_v55 = vpop.permute.xlu0 %355 }
 0x322   :  { %368 = vmatpush.bf16.msra.mxu0 %v356_v55 }
 0x325   :  { %v583_v57 = vpop.eup %582 }
 0x326   :  { %v263_v60 = vmul.f32 %v583_v57, %v571_v33  ;;  %v247_v61 = vpop.xlane.xlu1 %246  ;;  %481 = vmatpush.bf16.msrb.mxu0 %v472_v34 }
 0x327   :  { %584 = vrcp.f32 %v247_v61 }
 0x328   :  { %v271_v62 = vpack.c.bf16 %v263_v60, %v263_v60 }
 0x32a   :  { %v327_v0 = vunpack.c.l.b16 %v271_v62 }
 0x32c   :  { %v329_v1 = vpack.c.b16 %v328_v63, %v327_v0 }
 0x32d   :  { %v585_v3 = vpop.eup %584 }
 0x32e   :  { %v250_v2 = vpop.xlane.xlu1 %249  ;;  %543 = vmatmul.msk.bf16.vlgmr.msrb.gmra.mxu3 %vm178_vm2, %v329_v1  ;;  %v265_v4 = vmul.f32 %v585_v3, %v573_v37  ;;  %v559_v3 = vld [vmem:[%s770_s3] ss:$0 sm:$0xff]  ;;  %s514_s3 = sshll.u32 %s623_s16, 4  ;;  %s515_s3 = int_to_ptr.vmem [resolvable:$true] %s514_s3 }
 0x32f   :  { %586 = vrcp.f32 %v250_v2 }
 0x330   :  { %588 = vrcp.f32 %v232_v50  ;;  %v273_v6 = vpack.c.bf16 %v265_v4, %v265_v4 }
 0x331   :  { %590 = vrcp.f32 %v229_v24 }
 0x332   :  { %v352_v10 = vunpack.c.l.b16 %v273_v6 }
 0x335   :  { %v587_v5 = vpop.eup %586 }
 0x336   :  { %v266_v7 = vmul.f32 %v587_v5, %v575_v39  ;;  %v589_v9 = vpop.eup %588  ;;  %v383_v39 = vld [vmem:[%s769_s2] sm:$0xf] }
 0x337   :  { %v591_v13 = vpop.eup %590  ;;  %v260_v14 = vmul.f32 %v589_v9, %v714_v27  ;;  %v397_v40 = vsel %vm395_vm3, %v383_v39, 0 }
 0x338   :  { %v274_v8 = vpack.c.bf16 %v266_v7, %v266_v7  ;;  %v259_v16 = vmul.f32 %v591_v13, %v705_v59  ;;  %v385_v59 = vld [vmem:[%s769_s2 + $0x8] sm:$0xf] }
 0x339   :  { %v268_v17 = vpack.c.bf16 %v260_v14, %v260_v14  ;;  %v447_v27 = vsel %vm395_vm3, %v385_v59, 0 }
 0x33a   :  { %v353_v12 = vunpack.c.l.b16 %v274_v8  ;;  %v267_v18 = vpack.c.bf16 %v259_v16, %v259_v16  ;;  %456 = vmatpush.bf16.msra.mxu3 %v447_v27 }
 0x33b   :  { %v278_v19 = vunpack.c.l.b16 %v268_v17 }
 0x33c   :  { %v354_v15 = vpack.c.b16 %v353_v12, %v352_v10  ;;  %v277_v20 = vunpack.c.l.b16 %v267_v18 }
 0x33e   :  { %544 = vmatmul.msk.bf16.vlgmr.msra.gmra.mxu0 %vm178_vm2, %v354_v15  ;;  %v279_v22 = vpack.c.b16 %v278_v19, %v277_v20 }
 0x346   :  { %v281_v21 = vpop.permute.xlu1 %280 }
 0x347   :  { %293 = vmatpush.bf16.msrb.mxu1 %v281_v21 }
 0x34a   :  { %541 = vmatmul.msk.bf16.vlgmr.msrb.gmra.mxu1 %vm178_vm2, %v279_v22 }
 0x34b   :  { %406 = vmatpush.bf16.msra.mxu1 %v397_v40 }
 0x39d   :  { %v320_v29 = vpop.f32.mrf.mxu2 }
 0x39e   :  { %v377_v30 = vpack.c.bf16 %v320_v29, %v320_v29 }
 0x3a0   :  { %v415_v35 = vunpack.c.l.b16 %v377_v30 }
 0x3a5   :  { %v322_v31 = vpop.f32.mrf.mxu2 }
 0x3a6   :  { %v378_v33 = vpack.c.bf16 %v322_v31, %v322_v31 }
 0x3a8   :  { %v416_v36 = vunpack.c.l.b16 %v378_v33 }
 0x3aa   :  { %v417_v37 = vpack.c.b16 %v416_v36, %v415_v35 }
 0x3ac   :  { %546 = vmatmul.msk.bf16.vlgmr.msra.gmra.mxu2 %vm82_vm1, %v417_v37 }
 0x3b1   :  { %v345_v38 = vpop.f32.mrf.mxu3 }
 0x3b2   :  { %v379_v24 = vpack.c.bf16 %v345_v38, %v345_v38 }
 0x3b4   :  { %v440_v44 = vunpack.c.l.b16 %v379_v24 }
 0x3b9   :  { %v347_v41 = vpop.f32.mrf.mxu3 }
 0x3ba   :  { %v380_v42 = vpack.c.bf16 %v347_v41, %v347_v41 }
 0x3bb   :  { %v370_v43 = vpop.f32.mrf.mxu0 }
 0x3bc   :  { %v441_v28 = vunpack.c.l.b16 %v380_v42  ;;  %v381_v46 = vpack.c.bf16 %v370_v43, %v370_v43 }
 0x3be   :  { %v442_v45 = vpack.c.b16 %v441_v28, %v440_v44  ;;  %v465_v25 = vunpack.c.l.b16 %v381_v46 }
 0x3c0   :  { %547 = vmatmul.msk.bf16.vlgmr.msra.gmra.mxu3 %vm82_vm1, %v442_v45 }
 0x3c3   :  { %v372_v47 = vpop.f32.mrf.mxu0 }
 0x3c4   :  { %v382_v48 = vpack.c.bf16 %v372_v47, %v372_v47 }
 0x3c6   :  { %v466_v49 = vunpack.c.l.b16 %v382_v48 }
 0x3c7   :  { %v295_v50 = vpop.f32.mrf.mxu1 }
 0x3c8   :  { %v467_v51 = vpack.c.b16 %v466_v49, %v465_v25  ;;  %v375_v52 = vpack.c.bf16 %v295_v50, %v295_v50 }
 0x3ca   :  { %548 = vmatmul.msk.bf16.vlgmr.msrb.gmra.mxu0 %vm82_vm1, %v467_v51  ;;  %v389_v54 = vunpack.c.l.b16 %v375_v52 }
 0x3cf   :  { %v297_v11 = vpop.f32.mrf.mxu1 }
 0x3d0   :  { %v376_v53 = vpack.c.bf16 %v297_v11, %v297_v11 }
 0x3d2   :  { %v390_v55 = vunpack.c.l.b16 %v376_v53 }
 0x3d4   :  { %v391_v56 = vpack.c.b16 %v390_v55, %v389_v54 }
 0x3d6   :  { %545 = vmatmul.msk.bf16.vlgmr.msra.gmra.mxu1 %vm82_vm1, %v391_v56 }
 0x42f   :  { %v433_v57 = vpop.f32.mrf.mxu2 }
 0x430   :  { %v489_v62 = vsel %vm41_vm0, %v433_v57, 0.0 }
 0x437   :  { %v435_v5 = vpop.f32.mrf.mxu2 }
 0x438   :  { %v496_v10 = vsel %vm41_vm0, %v435_v5, 0.0 }
 0x443   :  { %v458_v58 = vpop.f32.mrf.mxu3 }
 0x444   :  { %v491_v1 = vsel %vm41_vm0, %v458_v58, 0.0 }
 0x447   :  { %v483_v60 = vpop.f32.mrf.mxu0 }
 0x448   :  { %v493_v4 = vsel %vm41_vm0, %v483_v60, 0.0 }
 0x44b   :  { %v460_v7 = vpop.f32.mrf.mxu3 }
 0x44c   :  { %v498_v15 = vsel %vm41_vm0, %v460_v7, 0.0 }
 0x44f   :  { %v485_v13 = vpop.f32.mrf.mxu0 }
 0x450   :  { %v500_v17 = vsel %vm41_vm0, %v485_v13, 0.0 }
 0x453   :  { %v408_v61 = vpop.f32.mrf.mxu1 }
 0x454   :  { %v488_v63 = vsel %vm41_vm0, %v408_v61, 0.0 }
 0x455   :  { %v490_v0 = vadd.f32 %v489_v62, %v488_v63 }
 0x457   :  { %v492_v2 = vadd.f32 %v491_v1, %v490_v0 }
 0x459   :  { %v494_v6 = vadd.f32 %v493_v4, %v492_v2 }
 0x45b   :  { %v506_v8 = vadd.f32 %v559_v3, %v494_v6  ;;  %v410_v9 = vpop.f32.mrf.mxu1 }
 0x45c   :  { %v495_v12 = vsel %vm41_vm0, %v410_v9, 0.0 }
 0x45d   :  { %508 = vst.msk [vmem:[#allocation2] sm:$0xff] %vm41_vm0, %v506_v8  ;;  %v497_v14 = vadd.f32 %v496_v10, %v495_v12 }
 0x45f   :  { %v499_v16 = vadd.f32 %v498_v15, %v497_v14 }
 0x461   :  { %v501_v18 = vadd.f32 %v500_v17, %v499_v16 }
 0x463   :  { %v507_v19 = vadd.f32 %v559_v3, %v501_v18 }
 0x465   :  { %509 = vst.msk [vmem:[#allocation2 + $0x8] sm:$0xff] %vm41_vm0, %v507_v19 }
 0x466   :  { %522 = dma.vmem_to_hbm [thread:$0]  %s515_s3, 256, %s517_s19, [#allocation3], %s624_s20, %s624_s20, %s625_s21  }
 0x467   :  { %616 = dma.done.wait [#allocation3], 256  }
 0x468   :  { %617 = vsyncadd [#allocation3], 4294967040 }
 0x469   :  { %527 = vsyncpa [#allocation3], 1 }

</bundles_post_ra>
